<compile_context>
chip_gen: v7x
topology: tpu7x:2x2x1
jax: 0.10.0
libtpu: 0.0.40
codegen_flags: <defaults>
</compile_context>

<pallas_src>
import jax
import jax.numpy as jnp
from jax.experimental import pallas as pl
from jax.experimental.pallas import tpu as pltpu


def _hbm_copy_kernel(x_ref, o_ref, sem):
    # Single HBM->HBM DMA of the whole (already metadata-flattened) array.
    # No VMEM staging, no grid, no per-step overhead — pure DMA.
    cp = pltpu.make_async_copy(x_ref, o_ref, sem)
    cp.start()
    cp.wait()


def _pallas_copy(flat2d: jax.Array) -> jax.Array:
    """Materializing copy of a (B, N) array via one HBM->HBM DMA."""
    total_bytes = flat2d.size * jnp.dtype(flat2d.dtype).itemsize
    return pl.pallas_call(
        _hbm_copy_kernel,
        out_shape=jax.ShapeDtypeStruct(flat2d.shape, flat2d.dtype),
        in_specs=[pl.BlockSpec(memory_space=pl.ANY)],
        out_specs=pl.BlockSpec(memory_space=pl.ANY),
        scratch_shapes=[pltpu.SemaphoreType.DMA],
        cost_estimate=pl.CostEstimate(
            flops=0, transcendentals=0, bytes_accessed=2 * total_bytes
        ),
    )(flat2d)


def flatten(x: jax.Array, *, materialize: bool = False) -> jax.Array:
    """Equivalent of torch: x.view(x.size(0), -1).

    Default (materialize=False): zero-copy metadata reshape — the recommended
    production path (0 bytes of HBM traffic).
    materialize=True: force a fresh buffer via a single Pallas HBM->HBM DMA
    (explicit-copy / benchmark path).
    """
    b = x.shape[0]
    n = 1
    for d in x.shape[1:]:
        n *= d
    flat2d = x.reshape(b, n)  # metadata-only, row-major == torch .view(B, -1)
    if not materialize:
        return flat2d
    return _pallas_copy(flat2d)


if __name__ == "__main__":
    key = jax.random.PRNGKey(0)
    # Small NCHW input consistent with the module's forward.
    x = jax.random.normal(key, (2, 4, 16, 16), dtype=jnp.float32)

    # Exercise the Pallas (materializing, single HBM->HBM DMA) kernel.
    out = flatten(x, materialize=True)
    jax.block_until_ready(out)

    # Correctness check against the plain-JAX reference (== torch .view(B, -1)).
    ref = x.reshape(x.shape[0], -1)
    assert out.shape == (2, 4 * 16 * 16), out.shape
    assert out.dtype == x.dtype
    assert bool(jnp.array_equal(out, ref))

    # Default (zero-copy) path must match too.
    out0 = flatten(x)
    jax.block_until_ready(out0)
    assert bool(jnp.array_equal(out0, ref))

    print("KERNEL_OK")
</pallas_src>

<mosaic_0001>
module attributes {stable_mosaic.version = 11 : i64} {
  func.func @_hbm_copy_kernel(%arg0: memref<2x1024xf32, #tpu.memory_space<any>>, %arg1: memref<2x1024xf32, #tpu.memory_space<any>>, %arg2: memref<!tpu.dma_semaphore, #tpu.memory_space<semaphore_mem>>) attributes {dimension_semantics = [], scalar_prefetch = 0 : i64, scratch_operands = 1 : i64, tpu.core_type = #tpu.core_type<tc>} {
    tpu.enqueue_dma source(%arg0 : memref<2x1024xf32, #tpu.memory_space<any>>) target(%arg1 : memref<2x1024xf32, #tpu.memory_space<any>>) target_semaphore(%arg2 : memref<!tpu.dma_semaphore, #tpu.memory_space<semaphore_mem>>)
    tpu.wait_dma2 semaphore(%arg2 : memref<!tpu.dma_semaphore, #tpu.memory_space<semaphore_mem>>) src(%arg0 : memref<2x1024xf32, #tpu.memory_space<any>>) dst(%arg1 : memref<2x1024xf32, #tpu.memory_space<any>>)
    return
  }
}

</mosaic_0001>

<bundles_post_ra>
// kernel: tpu_custom_call.1
= control target key start
LH: loop header
LB: loop body
LE: loop exit
PB: predicated region body
PF: predicated region fallthrough
CT: control target
= control target key end

     0   :  { %s35_s6 = smov [#allocation2]   ;;  %s36_s7 = smov [#allocation3]   ;;  %s54_s0 = inlined_call_operand.hbm [shape: f32[2,1024], index: 0, kind: input, shape index: {}]   ;;  %s55_s1 = inlined_call_operand.hbm [shape: f32[2,1024], index: 1, kind: output, shape index: {}]  }
   0x1   :  { %s37_s8 = smov 0  }
   0x2   :  { %18 = dma.general %s54_s0, 256, %s55_s1, %s35_s6, %s36_s7, [#allocation4], %s37_s8, 0  }
   0x3   :  { %33 = dma.done.wait [#allocation2], 256 }
   0x4   :  { %34 = vsyncadd [#allocation2], 4294967040 }
   0x5   :  { %23 = vsyncmov [#allocation2] }
   0x8   :  { %s24_s13 = vpop.sfrf %23 }
   0x9   :  { %p29_p0 = scmp.ne.s32.totalorder %s24_s13, 0 }
   0xb   :  { %28 = shalt.err (%p29_p0)  }

</bundles_post_ra>
